<compile_context>
chip_gen: v7x
topology: tpu7x:2x2x1
jax: 0.10.0
libtpu: 0.0.40
codegen_flags: <defaults>
</compile_context>

<pallas_src>
import functools

import jax
import jax.numpy as jnp
from jax.experimental import pallas as pl
from jax.experimental.pallas import tpu as pltpu


def _round_up(x, m):
    return ((x + m - 1) // m) * m


# ---------------------------------------------------------------------------
# mode == 'loss' kernel: per-row partial sums, accumulated in the output block
# ---------------------------------------------------------------------------
def _loss_kernel(pred_ref, gt_ref, abs_out_ref, sq_out_ref, *, ow, hw_valid,
                 mask_cols):
    # pred_ref / gt_ref : VMEM (tm, tn) tile of the (rows, cw) slab
    # abs_out_ref       : VMEM (tm, ow) per-row, per-lane partial sum |pred-gt|
    # sq_out_ref        : VMEM (tm, ow) per-row, per-lane partial sum ((p-g)/2)^2
    # The output block index is constant along the column (reduction) axis, so
    # it stays resident in VMEM and acts as the f32 accumulator.
    k = pl.program_id(1)

    @pl.when(k == 0)
    def _init():
        abs_out_ref[...] = jnp.zeros_like(abs_out_ref)
        sq_out_ref[...] = jnp.zeros_like(sq_out_ref)

    tm, tn = pred_ref.shape
    acc_abs = abs_out_ref[...]
    acc_sq = sq_out_ref[...]
    # Static unroll over ow-wide lane groups: pure VPU adds, no XLU reduction.
    for j in range(tn // ow):
        c0 = j * ow
        d = (pred_ref[:, c0:c0 + ow].astype(jnp.float32)
             - gt_ref[:, c0:c0 + ow].astype(jnp.float32))
        if mask_cols:
            # Tail column block of a ragged (HW % 128 != 0) slab: zero out the
            # out-of-range lanes (Pallas does not bounds-check VMEM tiles).
            col = jax.lax.broadcasted_iota(jnp.int32, (tm, ow), 1) + (k * tn + c0)
            d = jnp.where(col < hw_valid, d, 0.0)
        acc_abs = acc_abs + jnp.abs(d)
        h = d * 0.5
        acc_sq = acc_sq + h * h
    abs_out_ref[...] = acc_abs
    sq_out_ref[...] = acc_sq


def pipeline_loss(pred, gt, loss_cfg=None, *, row_tile=512, lane_tile=4096,
                  vmem_limit_bytes=48 * 1024 * 1024):
    """pred, gt: [B, C, H, W] (NCHW, like PyTorch; f32 or bf16).

    Returns a dict like forward(mode='loss') (minus external-net terms).
    Keep inputs bf16 end-to-end if the producer emits bf16 — the kernel is
    HBM-bound and upcasts per tile; do NOT cast f32->bf16 in a wrapper."""
    if loss_cfg is None:
        loss_cfg = {}
    assert pred.shape == gt.shape and pred.dtype == gt.dtype
    B, C, H, W = pred.shape
    BC, HW = B * C, H * W
    n_elems = BC * HW

    itemsize = pred.dtype.itemsize
    min_sub = max(8, 8 * (4 // max(1, itemsize)))   # 8 f32, 16 bf16
    row_tile = max(min_sub, _round_up(row_tile, min_sub))
    lane_tile = max(128, _round_up(lane_tile, 128))

    # Plan a *free* reshape (BC, HW) -> (rows, cw). No jnp.pad copies.
    if HW % 128 == 0:
        # cw = largest divisor of HW that is a multiple of 128 and <= lane_tile
        base = HW // 128
        best = 1
        for d in range(1, lane_tile // 128 + 1):
            if base % d == 0:
                best = d
        cw = 128 * best
        split = HW // cw
        tn = cw                           # single column block, all-parallel rows
    else:
        # ragged fallback: keep the full HW row, tile columns with a cdiv grid
        split = 1
        cw = HW
        tn = HW if HW < 128 else min(lane_tile, 128 * (HW // 128))

    rows = BC * split
    ow = min(128, tn)                      # output lane width
    mask_cols = (cw % tn) != 0             # tail column block needs masking

    if rows <= row_tile:
        tm = rows                          # full-dim block (always legal)
    else:
        tm = row_tile
        # keep 2 inputs x 2 buffers (+ outputs) inside the VMEM budget
        budget = int(0.8 * vmem_limit_bytes)
        while tm > min_sub and (4 * tm * tn * itemsize + 4 * tm * ow * 4) > budget:
            tm = max(min_sub, _round_up(tm // 2, min_sub))
        # prefer an even number of row blocks (v7x: 2 TCs share the parallel axis)
        nb = pl.cdiv(rows, tm)
        if nb > 1 and nb % 2 == 1:
            tm2 = _round_up(-(-rows // (nb + 1)), min_sub)
            if min_sub <= tm2 <= tm:
                tm = tm2

    pred2d = pred.reshape(rows, cw)        # free reshape
    gt2d = gt.reshape(rows, cw)

    grid = (pl.cdiv(rows, tm), pl.cdiv(cw, tn))

    kernel = functools.partial(_loss_kernel, ow=ow, hw_valid=cw,
                               mask_cols=mask_cols)

    cost = pl.CostEstimate(
        flops=6 * rows * cw,
        transcendentals=0,
        bytes_accessed=2 * rows * cw * itemsize + 2 * rows * ow * 4,
    )

    abs_rows, sq_rows = pl.pallas_call(
        kernel,
        out_shape=(
            jax.ShapeDtypeStruct((rows, ow), jnp.float32),
            jax.ShapeDtypeStruct((rows, ow), jnp.float32),
        ),
        grid_spec=pltpu.PrefetchScalarGridSpec(
            num_scalar_prefetch=0,
            grid=grid,
            in_specs=[
                pl.BlockSpec((tm, tn), lambda i, k: (i, k)),
                pl.BlockSpec((tm, tn), lambda i, k: (i, k)),
            ],
            out_specs=(
                pl.BlockSpec((tm, ow), lambda i, k: (i, 0)),
                pl.BlockSpec((tm, ow), lambda i, k: (i, 0)),
            ),
        ),
        compiler_params=pltpu.CompilerParams(
            dimension_semantics=("parallel", "arbitrary"),
            vmem_limit_bytes=vmem_limit_bytes,
        ),
        cost_estimate=cost,
    )(pred2d, gt2d)

    # Tiny finalize in the wrapper (O(rows*128) work): 128->1 lane reduce,
    # normalization, log10, weighting.
    abs_per_row = jnp.sum(abs_rows, axis=1)                 # (rows,)
    sq_per_row = jnp.sum(sq_rows, axis=1)                   # (rows,)

    l1 = jnp.sum(abs_per_row) / n_elems
    mse = sq_per_row.reshape(BC, split).sum(axis=1) / HW    # per (b, c)
    # NOTE: matches torch (-10*log10(mse)).mean(); mse == 0 -> +inf like torch.
    psnr = jnp.mean(-10.0 * jnp.log10(mse))

    l1_w = loss_cfg.get("l1_loss", 1.0)
    loss = l1_w * l1
    # TODO(synk): perc_loss (LPIPS) and gan_g_loss (discriminator) are external
    # pretrained networks; their weighted terms are omitted here.
    return {
        "loss": loss,
        "l1_loss": l1,
        "psnr": psnr,
        "mse_per_bc": mse.reshape(B, C),
    }


# ---------------------------------------------------------------------------
# mode == 'disc_loss' kernel (hinge variant) — tiny, two VMEM inputs, no stack
# ---------------------------------------------------------------------------
def _hinge_kernel(real_ref, fake_ref, loss_ref, mr_ref, mf_ref):
    real = real_ref[...].astype(jnp.float32)
    fake = fake_ref[...].astype(jnp.float32)
    loss_real = jnp.mean(jnp.maximum(1.0 - real, 0.0))   # relu(1 - logits_real)
    loss_fake = jnp.mean(jnp.maximum(1.0 + fake, 0.0))   # relu(1 + logits_fake)
    loss_ref[0, 0] = 0.5 * (loss_real + loss_fake)
    mr_ref[0, 0] = jnp.mean(real)
    mf_ref[0, 0] = jnp.mean(fake)


def pipeline_disc_loss(logits_real, logits_fake, *,
                       vmem_limit_bytes=48 * 1024 * 1024):
    """logits_*: [B, 1, H, W] discriminator outputs. Hinge disc loss."""
    assert logits_real.shape == logits_fake.shape
    B = logits_real.shape[0]
    xr = logits_real.reshape(B, -1)   # free reshapes, no jnp.stack HBM copy
    xf = logits_fake.reshape(B, -1)

    # TODO(synk): 'vanilla' (softplus) disc_loss_type and disc_cond_scale smap
    # conditioning are not implemented (hinge only, like loss_cfg default).
    loss, mr, mf = pl.pallas_call(
        _hinge_kernel,
        out_shape=(
            jax.ShapeDtypeStruct((1, 1), jnp.float32),
            jax.ShapeDtypeStruct((1, 1), jnp.float32),
            jax.ShapeDtypeStruct((1, 1), jnp.float32),
        ),
        in_specs=[
            pl.BlockSpec(memory_space=pltpu.MemorySpace.VMEM),
            pl.BlockSpec(memory_space=pltpu.MemorySpace.VMEM),
        ],
        out_specs=(
            pl.BlockSpec(memory_space=pltpu.MemorySpace.SMEM),
            pl.BlockSpec(memory_space=pltpu.MemorySpace.SMEM),
            pl.BlockSpec(memory_space=pltpu.MemorySpace.SMEM),
        ),
        compiler_params=pltpu.CompilerParams(
            vmem_limit_bytes=vmem_limit_bytes,
        ),
    )(xr, xf)

    return {
        "loss": loss[0, 0],
        "disc_logits_real": mr[0, 0],
        "disc_logits_fake": mf[0, 0],
    }


# ---------------------------------------------------------------------------
# reference (plain jnp) for checks
# ---------------------------------------------------------------------------
def _ref_loss(pred, gt):
    p = pred.astype(jnp.float32)
    g = gt.astype(jnp.float32)
    l1 = jnp.mean(jnp.abs(p - g))
    mse = jnp.mean(((g - p) / 2.0) ** 2, axis=(-2, -1))
    psnr = jnp.mean(-10.0 * jnp.log10(mse))
    return l1, mse, psnr


# ---------------------------------------------------------------------------
# main
# ---------------------------------------------------------------------------
if __name__ == "__main__":
    key = jax.random.PRNGKey(0)
    k1, k2, k3, k4, k5, k6 = jax.random.split(key, 6)

    # --- mode='loss': pred stands in for renderer(decode(encode(inp)), ...) ---
    B, C, H, W = 2, 3, 16, 16
    pred = jax.random.uniform(k1, (B, C, H, W), jnp.float32, -1.0, 1.0)
    gt = jax.random.uniform(k2, (B, C, H, W), jnp.float32, -1.0, 1.0)

    out = pipeline_loss(pred, gt, {"l1_loss": 1.0, "perc_loss": 1.0})
    out = jax.tree_util.tree_map(jax.block_until_ready, out)
    l1_r, mse_r, psnr_r = _ref_loss(pred, gt)
    assert jnp.allclose(out["l1_loss"], l1_r, atol=1e-5), "l1 mismatch"
    assert jnp.allclose(out["mse_per_bc"], mse_r.reshape(B, C), atol=1e-6), "mse mismatch"
    assert jnp.allclose(out["psnr"], psnr_r, atol=1e-4), "psnr mismatch"

    # --- spatial split + multiple (even, partial-tail) row blocks ------------
    B2, C2, H2, W2 = 2, 5, 64, 64       # rows = 80, tm -> 24 (4 blocks, tail=8)
    p2 = jax.random.uniform(k3, (B2, C2, H2, W2), jnp.float32, -1.0, 1.0)
    g2 = jax.random.uniform(k4, (B2, C2, H2, W2), jnp.float32, -1.0, 1.0)
    out2 = pipeline_loss(p2, g2, {}, row_tile=32, lane_tile=512)
    out2 = jax.tree_util.tree_map(jax.block_until_ready, out2)
    l1_r2, mse_r2, psnr_r2 = _ref_loss(p2, g2)
    assert jnp.allclose(out2["l1_loss"], l1_r2, atol=1e-5), "l1 mismatch (split)"
    assert jnp.allclose(out2["mse_per_bc"], mse_r2.reshape(B2, C2), atol=1e-6), "mse mismatch (split)"
    assert jnp.allclose(out2["psnr"], psnr_r2, atol=1e-4), "psnr mismatch (split)"

    # --- ragged HW (not a multiple of 128): cdiv column grid + in-kernel mask -
    B3, C3, H3, W3 = 2, 3, 15, 20       # HW = 300 -> grid cols = 3, masked tail
    p3 = jax.random.uniform(k5, (B3, C3, H3, W3), jnp.float32, -1.0, 1.0)
    g3 = jax.random.uniform(k6, (B3, C3, H3, W3), jnp.float32, -1.0, 1.0)
    out3 = pipeline_loss(p3, g3, {}, row_tile=8, lane_tile=128)
    out3 = jax.tree_util.tree_map(jax.block_until_ready, out3)
    l1_r3, mse_r3, psnr_r3 = _ref_loss(p3, g3)
    assert jnp.allclose(out3["l1_loss"], l1_r3, atol=1e-5), "l1 mismatch (ragged)"
    assert jnp.allclose(out3["mse_per_bc"], mse_r3.reshape(B3, C3), atol=1e-6), "mse mismatch (ragged)"
    assert jnp.allclose(out3["psnr"], psnr_r3, atol=1e-4), "psnr mismatch (ragged)"

    # --- bf16 inputs (halves HBM traffic; kernel upcasts per tile) -----------
    pb = pred.astype(jnp.bfloat16)
    gb = gt.astype(jnp.bfloat16)
    outb = pipeline_loss(pb, gb, {})
    outb = jax.tree_util.tree_map(jax.block_until_ready, outb)
    l1_rb, mse_rb, _ = _ref_loss(pb, gb)
    assert jnp.allclose(outb["l1_loss"], l1_rb, atol=1e-5), "l1 mismatch (bf16)"
    assert jnp.allclose(outb["mse_per_bc"], mse_rb.reshape(B, C), atol=1e-6), "mse mismatch (bf16)"

    # --- mode='disc_loss' with synthetic discriminator logits ----------------
    kr, kf = jax.random.split(jax.random.PRNGKey(1))
    logits_real = jax.random.normal(kr, (B, 1, H, W), jnp.float32)
    logits_fake = jax.random.normal(kf, (B, 1, H, W), jnp.float32)
    dout = pipeline_disc_loss(logits_real, logits_fake)
    dout = jax.tree_util.tree_map(jax.block_until_ready, dout)
    dloss_ref = 0.5 * (jnp.mean(jax.nn.relu(1.0 - logits_real))
                       + jnp.mean(jax.nn.relu(1.0 + logits_fake)))
    assert jnp.allclose(dout["loss"], dloss_ref, atol=1e-6), "hinge mismatch"
    assert jnp.allclose(dout["disc_logits_real"], jnp.mean(logits_real), atol=1e-6)
    assert jnp.allclose(dout["disc_logits_fake"], jnp.mean(logits_fake), atol=1e-6)

    print("KERNEL_OK")
</pallas_src>

<mosaic_0001>
module attributes {stable_mosaic.version = 11 : i64} {
  func.func @_loss_kernel(%arg0: i32, %arg1: i32, %arg2: memref<6x256xf32, #tpu.memory_space<vmem>>, %arg3: memref<6x256xf32, #tpu.memory_space<vmem>>, %arg4: memref<6x128xf32, #tpu.memory_space<vmem>>, %arg5: memref<6x128xf32, #tpu.memory_space<vmem>>) attributes {dimension_semantics = [#tpu.dimension_semantics<parallel>, #tpu.dimension_semantics<arbitrary>], iteration_bounds = array<i64: 1, 1>, scalar_prefetch = 0 : i64, scratch_operands = 0 : i64, tpu.core_type = #tpu.core_type<tc>, window_params = [{transform_indices = @transform_0, window_bounds = array<i64: 6, 256>}, {transform_indices = @transform_1, window_bounds = array<i64: 6, 256>}, {transform_indices = @transform_2, window_bounds = array<i64: 6, 128>}, {transform_indices = @transform_3, window_bounds = array<i64: 6, 128>}]} {
    %c0_i32 = arith.constant 0 : i32
    %0 = arith.cmpi eq, %arg1, %c0_i32 : i32
    %1 = arith.extui %0 : i1 to i32
    %c0_i32_0 = arith.constant 0 : i32
    %2 = arith.cmpi ne, %1, %c0_i32_0 : i32
    scf.if %2 {
      %cst_16 = arith.constant 0.000000e+00 : f32
      %25 = vector.broadcast %cst_16 : f32 to vector<6x128xf32>
      %c0_17 = arith.constant 0 : index
      %c0_18 = arith.constant 0 : index
      %26 = vector.load %arg4[%c0_17, %c0_18] : memref<6x128xf32, #tpu.memory_space<vmem>>, vector<6x128xf32>
      tpu.vector_store %arg4[%c0_17, %c0_18], %25 {strides = array<i32>} : memref<6x128xf32, #tpu.memory_space<vmem>>, vector<6x128xf32>,
      %cst_19 = arith.constant 0.000000e+00 : f32
      %27 = vector.broadcast %cst_19 : f32 to vector<6x128xf32>
      %c0_20 = arith.constant 0 : index
      %c0_21 = arith.constant 0 : index
      %28 = vector.load %arg5[%c0_20, %c0_21] : memref<6x128xf32, #tpu.memory_space<vmem>>, vector<6x128xf32>
      tpu.vector_store %arg5[%c0_20, %c0_21], %27 {strides = array<i32>} : memref<6x128xf32, #tpu.memory_space<vmem>>, vector<6x128xf32>,
    } else {
    }
    %c0 = arith.constant 0 : index
    %c0_1 = arith.constant 0 : index
    %3 = vector.load %arg4[%c0, %c0_1] : memref<6x128xf32, #tpu.memory_space<vmem>>, vector<6x128xf32>
    %c0_2 = arith.constant 0 : index
    %c0_3 = arith.constant 0 : index
    %4 = vector.load %arg5[%c0_2, %c0_3] : memref<6x128xf32, #tpu.memory_space<vmem>>, vector<6x128xf32>
    %c0_4 = arith.constant 0 : index
    %c0_5 = arith.constant 0 : index
    %5 = vector.load %arg2[%c0_4, %c0_5] : memref<6x256xf32, #tpu.memory_space<vmem>>, vector<6x128xf32>
    %c0_6 = arith.constant 0 : index
    %c0_7 = arith.constant 0 : index
    %6 = vector.load %arg3[%c0_6, %c0_7] : memref<6x256xf32, #tpu.memory_space<vmem>>, vector<6x128xf32>
    %7 = arith.subf %5, %6 : vector<6x128xf32>
    %8 = math.absf %7 : vector<6x128xf32>
    %9 = arith.addf %3, %8 : vector<6x128xf32>
    %cst = arith.constant 5.000000e-01 : f32
    %10 = vector.broadcast %cst : f32 to vector<6x128xf32>
    %11 = arith.mulf %7, %10 : vector<6x128xf32>
    %12 = arith.mulf %11, %11 : vector<6x128xf32>
    %13 = arith.addf %4, %12 : vector<6x128xf32>
    %c0_8 = arith.constant 0 : index
    %c128 = arith.constant 128 : index
    %14 = vector.load %arg2[%c0_8, %c128] : memref<6x256xf32, #tpu.memory_space<vmem>>, vector<6x128xf32>
    %c0_9 = arith.constant 0 : index
    %c128_10 = arith.constant 128 : index
    %15 = vector.load %arg3[%c0_9, %c128_10] : memref<6x256xf32, #tpu.memory_space<vmem>>, vector<6x128xf32>
    %16 = arith.subf %14, %15 : vector<6x128xf32>
    %17 = math.absf %16 : vector<6x128xf32>
    %18 = arith.addf %9, %17 : vector<6x128xf32>
    %cst_11 = arith.constant 5.000000e-01 : f32
    %19 = vector.broadcast %cst_11 : f32 to vector<6x128xf32>
    %20 = arith.mulf %16, %19 : vector<6x128xf32>
    %21 = arith.mulf %20, %20 : vector<6x128xf32>
    %22 = arith.addf %13, %21 : vector<6x128xf32>
    %c0_12 = arith.constant 0 : index
    %c0_13 = arith.constant 0 : index
    %23 = vector.load %arg4[%c0_12, %c0_13] : memref<6x128xf32, #tpu.memory_space<vmem>>, vector<6x128xf32>
    tpu.vector_store %arg4[%c0_12, %c0_13], %18 {strides = array<i32>} : memref<6x128xf32, #tpu.memory_space<vmem>>, vector<6x128xf32>,
    %c0_14 = arith.constant 0 : index
    %c0_15 = arith.constant 0 : index
    %24 = vector.load %arg5[%c0_14, %c0_15] : memref<6x128xf32, #tpu.memory_space<vmem>>, vector<6x128xf32>
    tpu.vector_store %arg5[%c0_14, %c0_15], %22 {strides = array<i32>} : memref<6x128xf32, #tpu.memory_space<vmem>>, vector<6x128xf32>,
    return
  }
  func.func @transform_0(%arg0: i32, %arg1: i32) -> (i32, i32) {
    %c0_i32 = arith.constant 0 : i32
    return %arg0, %arg1 : i32, i32
  }
  func.func @transform_1(%arg0: i32, %arg1: i32) -> (i32, i32) {
    %c0_i32 = arith.constant 0 : i32
    return %arg0, %arg1 : i32, i32
  }
  func.func @transform_2(%arg0: i32, %arg1: i32) -> (i32, i32) {
    %c0_i32 = arith.constant 0 : i32
    %c0_i32_0 = arith.constant 0 : i32
    return %arg0, %c0_i32 : i32, i32
  }
  func.func @transform_3(%arg0: i32, %arg1: i32) -> (i32, i32) {
    %c0_i32 = arith.constant 0 : i32
    %c0_i32_0 = arith.constant 0 : i32
    return %arg0, %c0_i32 : i32, i32
  }
}

</mosaic_0001>

<bundles_post_ra>
// kernel: tpu_custom_call.1
= control target key start
LH: loop header
LB: loop body
LE: loop exit
PB: predicated region body
PF: predicated region fallthrough
CT: control target
= control target key end

     0   :  { %9 = vsyncpa [#allocation3], 0  ;;  %s269_s0 = inlined_call_operand.hbm [shape: f32[6,256], index: 0, kind: input, shape index: {}]   ;;  %s270_s1 = inlined_call_operand.hbm [shape: f32[6,256], index: 1, kind: input, shape index: {}]   ;;  %s271_s2 = inlined_call_operand.hbm [shape: f32[6,128], index: 2, kind: output, shape index: {0}]   ;;  %s272_s3 = inlined_call_operand.hbm [shape: f32[6,128], index: 3, kind: output, shape index: {1}]  }
   0x1   :  { %10 = vsyncpa [#allocation6], 0 }
   0x2   :  { %11 = vsyncpa [#allocation4], 0 }
   0x3   :  { %12 = vsyncpa [#allocation9], 0  ;;  %s196_s12 = smov [#allocation2]   ;;  %s197_s14 = smov [#allocation5]  }
   0x4   :  { %s19_s13 = sshll.u32 %s196_s12, 4  ;;  %s29_s15 = sshll.u32 %s197_s14, 4  ;;  %s20_s13 = int_to_ptr.vmem [resolvable:$true] %s19_s13  ;;  %s30_s15 = int_to_ptr.vmem [resolvable:$true] %s29_s15 }
   0x5   :  { %s100_s18 = scalar_lea.hbm %s269_s0, 256 }
   0x6   :  { %p101_p0 = scmp.ne.s32.totalorder %s269_s0, %s100_s18  ;;  %p104_p1 = scmp.lt.u32.totalorder %s100_s18, %s269_s0 }
   0x8   :  { %p106_p2 = pnand %p104_p1, %p101_p0 }
   0xa   :  { %109 = shalt.err (!%p106_p2)
}
   0xb   :  { %s110_s23 = scalar_lea.vmem %s20_s13, 256  ;;  %p115_p4 = scmp.lt.s32.totalorder %s20_s13, %s20_s13 }
   0xc   :  { %p111_p3 = scmp.ne.s32.totalorder %s20_s13, %s110_s23  ;;  %p116_p5 = scmp.lt.s32.totalorder %s110_s23, %s110_s23 }
   0xe   :  { %p117_p6 = por %p116_p5, %p115_p4 }
  0x10   :  { %p118_p7 = pnand %p117_p6, %p111_p3 }
  0x12   :  { %121 = shalt.err (!%p118_p7)
}
  0x13   :  { %22 = dma.hbm_to_vmem [thread:$0]  %s269_s0, 256, %s20_s13, [#allocation3]  }
  0x14   :  { %s122_s28 = scalar_lea.hbm %s270_s1, 256 }
  0x15   :  { %p123_p8 = scmp.ne.s32.totalorder %s270_s1, %s122_s28  ;;  %p126_p9 = scmp.lt.u32.totalorder %s122_s28, %s270_s1 }
  0x17   :  { %p128_p10 = pnand %p126_p9, %p123_p8 }
  0x19   :  { %131 = shalt.err (!%p128_p10)
}
  0x1a   :  { %s132_s6 = scalar_lea.vmem %s30_s15, 256  ;;  %p137_p12 = scmp.lt.s32.totalorder %s30_s15, %s30_s15 }
  0x1b   :  { %p133_p11 = scmp.ne.s32.totalorder %s30_s15, %s132_s6  ;;  %p138_p13 = scmp.lt.s32.totalorder %s132_s6, %s132_s6 }
  0x1d   :  { %p139_p0 = por %p138_p13, %p137_p12 }
  0x1f   :  { %p140_p1 = pnand %p139_p0, %p133_p11 }
  0x21   :  { %143 = shalt.err (!%p140_p1)
}
  0x22   :  { %32 = dma.hbm_to_vmem [thread:$0]  %s270_s1, 256, %s30_s15, [#allocation6]  }
  0x23   :  { %188 = dma.done.wait [#allocation3], 256  }
  0x24   :  { %189 = vsyncadd [#allocation3], 4294967040 }
  0x25   :  { %190 = dma.done.wait [#allocation6], 256  }
  0x26   :  { %191 = vsyncadd [#allocation6], 4294967040  ;;  %v198_v0 = vmov 0.0   ;;  %v47_v1 = vld [vmem:[#allocation2] sm:$0x3f]  ;;  %s199_s1 = smov [#allocation7]  }
  0x27   :  { %43 = vst [vmem:[#allocation7] sm:$0x3f] %v198_v0  ;;  %44 = vst [vmem:[#allocation8] sm:$0x3f] %v198_v0  ;;  %v48_v2 = vld [vmem:[#allocation5] sm:$0x3f] }
  0x28   :  { %v55_v3 = vld [vmem:[#allocation2 + $0x8] sm:$0x3f]  ;;  %v49_v4 = vsub.f32 %v47_v1, %v48_v2  ;;  %v56_v5 = vld [vmem:[#allocation5 + $0x8] sm:$0x3f]  ;;  %s71_s8 = sshll.u32 %s199_s1, 4  ;;  %s200_s9 = smov [#allocation8]   ;;  %s72_s8 = int_to_ptr.vmem [resolvable:$true] %s71_s8 }
  0x29   :  { %v57_v7 = vsub.f32 %v55_v3, %v56_v5  ;;  %s81_s10 = sshll.u32 %s200_s9, 4  ;;  %s144_s11 = scalar_lea.vmem %s72_s8, 128  ;;  %s82_s10 = int_to_ptr.vmem [resolvable:$true] %s81_s10 }
  0x2a   :  { %v50_v8 = vand.u32 2147483647, %v49_v4  ;;  %v52_v9 = vmul.f32 0.5, %v49_v4  ;;  %p145_p2 = scmp.ne.s32.totalorder %s72_s8, %s144_s11  ;;  %p149_p3 = scmp.lt.s32.totalorder %s72_s8, %s72_s8 }
  0x2b   :  { %v58_v10 = vand.u32 2147483647, %v57_v7  ;;  %v60_v12 = vmul.f32 0.5, %v57_v7  ;;  %p150_p4 = scmp.lt.s32.totalorder %s144_s11, %s144_s11 }
  0x2c   :  { %v53_v14 = vmul.f32 %v52_v9, %v52_v9 }
  0x2d   :  { %v61_v15 = vmul.f32 %v60_v12, %v60_v12  ;;  %p151_p5 = por %p150_p4, %p149_p3 }
  0x2e   :  { %v45_v6 = vld [vmem:[#allocation7] sm:$0x3f]  ;;  %v46_v11 = vld [vmem:[#allocation8] sm:$0x3f] }
  0x2f   :  { %v51_v13 = vadd.f32 %v50_v8, %v45_v6  ;;  %v54_v17 = vadd.f32 %v53_v14, %v46_v11  ;;  %p152_p6 = pnand %p151_p5, %p145_p2 }
  0x31   :  { %v59_v16 = vadd.f32 %v58_v10, %v51_v13  ;;  %v62_v18 = vadd.f32 %v61_v15, %v54_v17 }
  0x33   :  { %63 = vst [vmem:[#allocation7] sm:$0x3f] %v59_v16 }
  0x34   :  { %155 = shalt.err (!%p152_p6)
}
  0x35   :  { %s156_s14 = scalar_lea.hbm %s271_s2, 128 }
  0x36   :  { %p157_p7 = scmp.ne.s32.totalorder %s271_s2, %s156_s14  ;;  %p160_p8 = scmp.lt.u32.totalorder %s156_s14, %s271_s2 }
  0x38   :  { %p162_p9 = pnand %p160_p8, %p157_p7 }
  0x3a   :  { %165 = shalt.err (!%p162_p9)
}
  0x3b   :  { %74 = dma.vmem_to_hbm [thread:$0]  %s72_s8, 128, %s271_s2, [#allocation4]   ;;  %64 = vst [vmem:[#allocation8] sm:$0x3f] %v62_v18 }
  0x3c   :  { %s166_s21 = scalar_lea.vmem %s82_s10, 128  ;;  %p171_p11 = scmp.lt.s32.totalorder %s82_s10, %s82_s10 }
  0x3d   :  { %p167_p10 = scmp.ne.s32.totalorder %s82_s10, %s166_s21  ;;  %p172_p12 = scmp.lt.s32.totalorder %s166_s21, %s166_s21 }
  0x3f   :  { %p173_p13 = por %p172_p12, %p171_p11 }
  0x41   :  { %p174_p0 = pnand %p173_p13, %p167_p10 }
  0x43   :  { %177 = shalt.err (!%p174_p0)
}
  0x44   :  { %s178_s24 = scalar_lea.hbm %s272_s3, 128 }
  0x45   :  { %p179_p1 = scmp.ne.s32.totalorder %s272_s3, %s178_s24  ;;  %p182_p2 = scmp.lt.u32.totalorder %s178_s24, %s272_s3 }
  0x47   :  { %p184_p3 = pnand %p182_p2, %p179_p1 }
  0x49   :  { %187 = shalt.err (!%p184_p3)
}
  0x4a   :  { %84 = dma.vmem_to_hbm [thread:$0]  %s82_s10, 128, %s272_s3, [#allocation9]  }
  0x4b   :  { %192 = dma.done.wait [#allocation4], 128  }
  0x4c   :  { %193 = vsyncadd [#allocation4], 4294967168 }
  0x4d   :  { %194 = dma.done.wait [#allocation9], 128  }
  0x4e   :  { %195 = vsyncadd [#allocation9], 4294967168 }
  0x4f   :  { %91 = vsyncpa [#allocation3], 1 }
  0x50   :  { %92 = vsyncpa [#allocation6], 1 }
  0x51   :  { %93 = vsyncpa [#allocation4], 1 }
  0x52   :  { %94 = vsyncpa [#allocation9], 1 }

</bundles_post_ra>
